<compile_context>
chip_gen: v5e
topology: v5e:2x2
jax: 0.10.0
libtpu: 0.0.40
codegen_flags: <defaults>
</compile_context>

<pallas_src>
import functools
import math

import jax
import jax.numpy as jnp
from jax import lax
from jax.experimental import pallas as pl
from jax.experimental.pallas import tpu as pltpu


def _curricular_face_kernel(feats_ref, w_ref, labels_ref, rowc_ref, t_ref, out_ref, *,
                            scale, class_tile, compute_dtype):
    """One class tile j:
         cos = min((feats_n @ w_tile) * rsqrt(sum(w_tile^2, axis=0)), 1)
         u   = s * cos
         u   = where(cos > cos(theta_y+m), u * (t + cos), u)     # hard negatives
         u   = where(col == label, s * final_target_logit, u)    # target scatter
    """
    j = pl.program_id(0)

    feats = feats_ref[...]                         # (B, D)  normalized rows, compute dtype
    w = w_ref[...]                                 # (D, TC) classifier tile, storage dtype
    w_c = w if w.dtype == compute_dtype else w.astype(compute_dtype)

    # Column sum-of-squares with f32 accumulation.  Squares stay in the compute
    # dtype (bf16 VPU on v6e/v7x); the upcast fuses into the sublane reduce so
    # no (D, TC) f32 temporary is materialized.  rsqrt lands on the EUP slot.
    w_sumsq = jnp.sum(w_c * w_c, axis=0, keepdims=True, dtype=jnp.float32)   # (1, TC)
    inv_w_norm = lax.rsqrt(jnp.maximum(w_sumsq, 1e-24))                      # 1/max(||w||,1e-12)

    cos = jnp.dot(feats, w_c, preferred_element_type=jnp.float32) * inv_w_norm
    # Upper clamp only: the -1 side can only be violated by rounding eps and the
    # hard-negative / scatter paths are insensitive to it (saves a VPU op/elem).
    cos = jnp.minimum(cos, 1.0)                                              # (B, TC) f32

    t = t_ref[0, 0]
    cos_theta_m = rowc_ref[:, 0:1]                 # (B, 1) f32: cos(theta_y + m)
    target_scaled = rowc_ref[:, 1:2]               # (B, 1) f32: s * final_target_logit

    hard = cos > cos_theta_m
    u = cos * scale
    u = jnp.where(hard, u * (t + cos), u)          # s*cos*(t+cos) on hard negatives

    # Scatter the pre-scaled target logit; fold the tile offset into the (B, 1)
    # labels instead of the (B, TC) iota (saves a full-size add per element).
    col = lax.broadcasted_iota(jnp.int32, u.shape, 1)
    labels_local = labels_ref[...] - j * class_tile
    u = jnp.where(col == labels_local, target_scaled, u)

    out_ref[...] = u.astype(out_ref.dtype)


def _vmem_capacity_bytes():
    try:
        return int(pltpu.get_tpu_info().vmem_capacity_bytes)
    except Exception:
        return 64 << 20          # conservative (v7x per-TC) fallback


def _pick_class_tile(batch, num_class, requested, vmem_cap):
    if requested is None:
        if vmem_cap >= (96 << 20):          # v5e / v6e (128 MiB VMEM): big tiles
            requested = 8192 if batch <= 256 else 4096
        else:                                # v7x (64 MiB / TC): keep headroom
            requested = 2048 if batch >= 512 else 4096
    if requested >= num_class:
        return num_class
    return max(128, (min(requested, num_class) // 128) * 128)   # lane-dense tiles


def _vmem_limit_bytes(batch, feat_dim, class_tile, w_itemsize, c_itemsize,
                      out_itemsize, vmem_cap):
    stream = 2 * feat_dim * class_tile * w_itemsize        # double-buffered weight tiles
    downcast = feat_dim * class_tile * c_itemsize          # in-kernel compute-dtype tile copy
    out_buf = 2 * batch * class_tile * out_itemsize        # double-buffered output tiles
    feats_rs = 2 * batch * feat_dim * c_itemsize           # replicated feats
    epilogue = 4 * batch * class_tile * 4                  # f32 matmul acc + cos/u temporaries
    est = stream + downcast + out_buf + feats_rs + epilogue + 16 * batch * 4 + (64 << 10)
    hi = int(0.75 * vmem_cap)                              # leave headroom (v7x: 64 MiB/TC)
    return int(min(hi, max(32 << 20, int(1.3 * est))))


def curricular_face_forward(feats, weight, labels, t, *, m=0.5, s=64.0,
                            class_tile=None, compute_dtype=jnp.bfloat16,
                            out_dtype=jnp.float32):
    """feats: (B, D), weight: (D, C) (f32 or bf16-resident), labels: (B,) int,
    t: (1,) EMA buffer.  Returns (logits (B, C) in out_dtype, updated t (1,))."""
    B, D = feats.shape
    D2, C = weight.shape
    assert D == D2, "feat_dim mismatch"

    eps = 1e-12
    cos_m, sin_m = math.cos(m), math.sin(m)
    threshold = math.cos(math.pi - m)
    mm = math.sin(math.pi - m) * m

    labels = labels.reshape(B).astype(jnp.int32)

    # ---- cheap O(B*D) prologue (plain JAX): per-row scalars + EMA t update ----
    feats32 = feats.astype(jnp.float32)
    f_norm = jnp.sqrt(jnp.sum(feats32 * feats32, axis=1, keepdims=True))
    feats_n = feats32 / jnp.maximum(f_norm, eps)                      # (B, D)

    # Gather FIRST, cast after: only the B label columns are touched (avoids a
    # full (D, C) f32 materialization of the classifier weight).
    w_y = jnp.take(weight, labels, axis=1).astype(jnp.float32)        # (D, B)
    wy_norm = jnp.sqrt(jnp.sum(w_y * w_y, axis=0, keepdims=True))
    w_y_n = w_y / jnp.maximum(wy_norm, eps)
    target_logit = jnp.clip(jnp.sum(feats_n * w_y_n.T, axis=1, keepdims=True),
                            -1.0, 1.0)                                # (B, 1)

    sin_theta = jnp.sqrt(jnp.maximum(1.0 - target_logit * target_logit, 0.0))
    cos_theta_m = target_logit * cos_m - sin_theta * sin_m            # cos(theta_y + m)
    final_target = jnp.where(target_logit > threshold,
                             cos_theta_m, target_logit - mm)          # (B, 1)

    # EMA buffer update (modulation uses the *updated* t, as in PyTorch).
    t_new = jnp.mean(target_logit) * 0.01 + 0.99 * t.astype(jnp.float32).reshape(())
    t_smem = t_new.reshape(1, 1)

    # Per-row constants merged into one (B, 2) replicated block:
    #   col 0: cos(theta_y + m)      (compared against cos)
    #   col 1: s * final_target      (pre-scaled -> the x s never hits the target path twice)
    row_consts = jnp.concatenate([cos_theta_m, final_target * float(s)],
                                 axis=1).astype(jnp.float32)          # (B, 2)

    # ---- class-tiled Pallas kernel: streams the (D, C) weight ----------------
    vmem_cap = _vmem_capacity_bytes()
    tc = _pick_class_tile(B, C, class_tile, vmem_cap)
    num_tiles = pl.cdiv(C, tc)

    feats_c = feats_n.astype(compute_dtype)
    labels_2d = labels.reshape(B, 1)

    kernel = functools.partial(_curricular_face_kernel, scale=float(s),
                               class_tile=tc, compute_dtype=compute_dtype)

    vmem_limit = _vmem_limit_bytes(B, D, tc,
                                   jnp.dtype(weight.dtype).itemsize,
                                   jnp.dtype(compute_dtype).itemsize,
                                   jnp.dtype(out_dtype).itemsize,
                                   vmem_cap)

    out = pl.pallas_call(
        kernel,
        out_shape=jax.ShapeDtypeStruct((B, C), out_dtype),
        grid_spec=pltpu.PrefetchScalarGridSpec(
            num_scalar_prefetch=0,
            grid=(num_tiles,),
            in_specs=[
                pl.BlockSpec((B, D), lambda j: (0, 0)),     # feats_n (resident)
                # Weight streamed in its storage dtype (no wrapper-side cast pass);
                # downcast per tile in-kernel if needed.  (Sweep pl.Buffered(3)
                # here if the profile shows exposed DMA waits.)
                pl.BlockSpec((D, tc), lambda j: (0, j)),
                pl.BlockSpec((B, 1), lambda j: (0, 0)),     # labels
                pl.BlockSpec((B, 2), lambda j: (0, 0)),     # [cos(theta_y+m), s*final_target]
                pl.BlockSpec(memory_space=pltpu.MemorySpace.SMEM),  # updated t scalar
            ],
            out_specs=pl.BlockSpec((B, tc), lambda j: (0, j)),
        ),
        compiler_params=pltpu.CompilerParams(
            dimension_semantics=("parallel",),
            vmem_limit_bytes=vmem_limit,
        ),
    )(feats_c, weight, labels_2d, row_consts, t_smem)

    return out, t_new.reshape(1)


def _reference_forward(feats, weight, labels, t, m, s):
    """Pure-JAX transcription of the PyTorch module (f32, highest precision)."""
    cos_m, sin_m = math.cos(m), math.sin(m)
    threshold = math.cos(math.pi - m)
    mm = math.sin(math.pi - m) * m
    eps = 1e-12

    kernel_norm = weight / jnp.maximum(jnp.linalg.norm(weight, axis=0, keepdims=True), eps)
    f_n = feats / jnp.maximum(jnp.linalg.norm(feats, axis=1, keepdims=True), eps)
    cos_theta = jnp.clip(jnp.matmul(f_n, kernel_norm, precision="highest"), -1.0, 1.0)
    origin_cos = cos_theta

    target_logit = cos_theta[jnp.arange(feats.shape[0]), labels][:, None]
    sin_theta = jnp.sqrt(jnp.maximum(1.0 - target_logit ** 2, 0.0))
    cos_theta_m = target_logit * cos_m - sin_theta * sin_m
    mask = cos_theta > cos_theta_m
    final_target = jnp.where(target_logit > threshold, cos_theta_m, target_logit - mm)
    t_new = jnp.mean(target_logit) * 0.01 + 0.99 * t
    cos_theta = jnp.where(mask, cos_theta * (t_new + cos_theta), cos_theta)
    onehot = jax.nn.one_hot(labels, weight.shape[1], dtype=jnp.bool_)
    cos_theta = jnp.where(onehot, final_target, cos_theta)
    return cos_theta * s, t_new, origin_cos, cos_theta_m


if __name__ == "__main__":
    feat_dim, num_class, batch = 32, 512, 8
    m, s = 0.5, 64.0

    key = jax.random.PRNGKey(0)
    k_w, k_f, k_l = jax.random.split(key, 3)
    weight = 0.01 * jax.random.normal(k_w, (feat_dim, num_class), jnp.float32)  # normal_(std=0.01)
    feats = jax.random.normal(k_f, (batch, feat_dim), jnp.float32)
    labels = jax.random.randint(k_l, (batch,), 0, num_class, dtype=jnp.int32)
    t0 = jnp.zeros((1,), jnp.float32)                                           # buffer 't'

    ref_out, ref_t, ref_cos, ref_ctm = _reference_forward(feats, weight, labels, t0, m, s)

    # Elements whose hard-negative mask decision is numerically ambiguous
    # (cos ~ cos(theta_y+m)) can legitimately flip under reduced matmul
    # precision; exclude them from the element-wise check.
    ambiguous = jnp.abs(ref_cos - ref_ctm) < 0.02
    row_ids = jnp.arange(batch)

    def check(out, atol, target_atol):
        assert out.shape == (batch, num_class)
        out32 = out.astype(jnp.float32)
        diff = jnp.abs(out32 - ref_out)
        ok = jnp.where(ambiguous, True, diff <= atol)
        assert bool(jnp.all(ok)), (
            f"mismatch: max diff {float(jnp.max(jnp.where(ambiguous, 0.0, diff)))}")
        # target columns (angular-margin path) are precision-insensitive -> tight
        assert bool(jnp.allclose(out32[row_ids, labels], ref_out[row_ids, labels],
                                 atol=target_atol)), "target-logit column mismatch"

    # float32 compute / float32 output path
    out32_, t32 = curricular_face_forward(feats, weight, labels, t0, m=m, s=s,
                                          class_tile=128,
                                          compute_dtype=jnp.float32,
                                          out_dtype=jnp.float32)
    jax.block_until_ready(out32_)
    check(out32_, atol=0.5, target_atol=1e-3)
    assert bool(jnp.allclose(t32, ref_t, atol=1e-5)), "t buffer mismatch"

    # Production path: bf16 MXU stream (f32 weight downcast per tile in-kernel,
    # no wrapper-side (D, C) cast pass) + bf16 logits (smallest HBM writeback).
    # TODO(synk): for the minimum HBM footprint keep the classifier parameter
    # bf16-resident end-to-end; this kernel accepts it unchanged.
    out16, t16 = curricular_face_forward(feats, weight, labels, t0, m=m, s=s,
                                         class_tile=128,
                                         compute_dtype=jnp.bfloat16,
                                         out_dtype=jnp.bfloat16)
    jax.block_until_ready(out16)
    check(out16, atol=1.5, target_atol=0.35)
    assert bool(jnp.allclose(t16, ref_t, atol=1e-5)), "t buffer mismatch (bf16 run)"

    print("KERNEL_OK")
</pallas_src>

<mosaic_0001>
module attributes {stable_mosaic.version = 11 : i64} {
  func.func @_curricular_face_kernel(%arg0: i32, %arg1: memref<8x32xf32, #tpu.memory_space<vmem>>, %arg2: memref<32x128xf32, #tpu.memory_space<vmem>>, %arg3: memref<8x1xi32, #tpu.memory_space<vmem>>, %arg4: memref<8x2xf32, #tpu.memory_space<vmem>>, %arg5: memref<1x1xf32, #tpu.memory_space<smem>>, %arg6: memref<8x128xf32, #tpu.memory_space<vmem>>) attributes {dimension_semantics = [#tpu.dimension_semantics<parallel>], iteration_bounds = array<i64: 4>, scalar_prefetch = 0 : i64, scratch_operands = 0 : i64, tpu.core_type = #tpu.core_type<tc>, window_params = [{pipeline_mode = #tpu.pipeline_mode<synchronous>, transform_indices = @transform_0, window_bounds = array<i64: 8, 32>}, {transform_indices = @transform_1, window_bounds = array<i64: 32, 128>}, {pipeline_mode = #tpu.pipeline_mode<synchronous>, transform_indices = @transform_2, window_bounds = array<i64: 8, 1>}, {pipeline_mode = #tpu.pipeline_mode<synchronous>, transform_indices = @transform_3, window_bounds = array<i64: 8, 2>}, {transform_indices = @transform_4, window_bounds = array<i64: 1, 1>}, {transform_indices = @transform_5, window_bounds = array<i64: 8, 128>}]} {
    %c0 = arith.constant 0 : index
    %c0_0 = arith.constant 0 : index
    %0 = vector.load %arg1[%c0, %c0_0] : memref<8x32xf32, #tpu.memory_space<vmem>>, vector<8x32xf32>
    %c0_1 = arith.constant 0 : index
    %c0_2 = arith.constant 0 : index
    %1 = vector.load %arg2[%c0_1, %c0_2] : memref<32x128xf32, #tpu.memory_space<vmem>>, vector<32x128xf32>
    %2 = arith.mulf %1, %1 : vector<32x128xf32>
    %cst = arith.constant dense<0.000000e+00> : vector<128xf32>
    %3 = vector.multi_reduction <add>, %2, %cst [0] : vector<32x128xf32> to vector<128xf32>
    %4 = vector.shape_cast %3 : vector<128xf32> to vector<1x128xf32>
    %cst_3 = arith.constant 1.000000e-24 : f32
    %5 = vector.broadcast %cst_3 : f32 to vector<1x128xf32>
    %6 = arith.maximumf %4, %5 : vector<1x128xf32>
    %7 = math.rsqrt %6 : vector<1x128xf32>
    %cst_4 = arith.constant dense<0.000000e+00> : vector<8x128xf32>
    %8 = tpu.matmul %0, %1, %cst_4 {dimension_numbers = #tpu.dot_dimension_numbers<[1], [0], [0], [1], [0, 0, 1, 1], [], []>} : vector<8x32xf32>, vector<32x128xf32>, vector<8x128xf32> -> vector<8x128xf32>
    %9 = vector.broadcast %7 : vector<1x128xf32> to vector<8x128xf32>
    %10 = arith.mulf %8, %9 : vector<8x128xf32>
    %cst_5 = arith.constant 1.000000e+00 : f32
    %11 = vector.broadcast %cst_5 : f32 to vector<8x128xf32>
    %12 = arith.minimumf %10, %11 : vector<8x128xf32>
    %c0_6 = arith.constant 0 : index
    %c0_7 = arith.constant 0 : index
    %13 = memref.load %arg5[%c0_6, %c0_7] : memref<1x1xf32, #tpu.memory_space<smem>>
    %c0_8 = arith.constant 0 : index
    %c0_9 = arith.constant 0 : index
    %14 = vector.load %arg4[%c0_8, %c0_9] : memref<8x2xf32, #tpu.memory_space<vmem>>, vector<8x1xf32>
    %c0_10 = arith.constant 0 : index
    %c1 = arith.constant 1 : index
    %15 = vector.load %arg4[%c0_10, %c1] : memref<8x2xf32, #tpu.memory_space<vmem>>, vector<8x1xf32>
    %16 = vector.broadcast %14 : vector<8x1xf32> to vector<8x128xf32>
    %17 = arith.cmpf ogt, %12, %16 : vector<8x128xf32>
    %cst_11 = arith.constant 6.400000e+01 : f32
    %18 = vector.broadcast %cst_11 : f32 to vector<8x128xf32>
    %19 = arith.mulf %12, %18 : vector<8x128xf32>
    %20 = vector.broadcast %13 : f32 to vector<8x128xf32>
    %21 = arith.addf %20, %12 : vector<8x128xf32>
    %22 = arith.mulf %19, %21 : vector<8x128xf32>
    %23 = arith.select %17, %22, %19 : vector<8x128xi1>, vector<8x128xf32>
    %24 = tpu.iota {dimensions = array<i32: 1>} : vector<8x128xi32>
    %c0_12 = arith.constant 0 : index
    %c0_13 = arith.constant 0 : index
    %25 = vector.load %arg3[%c0_12, %c0_13] : memref<8x1xi32, #tpu.memory_space<vmem>>, vector<8x1xi32>
    %c128_i32 = arith.constant 128 : i32
    %26 = arith.muli %arg0, %c128_i32 : i32
    %27 = vector.broadcast %26 : i32 to vector<8x1xi32>
    %28 = arith.subi %25, %27 : vector<8x1xi32>
    %29 = vector.broadcast %28 : vector<8x1xi32> to vector<8x128xi32>
    %30 = arith.cmpi eq, %24, %29 : vector<8x128xi32>
    %31 = vector.shape_cast %15 : vector<8x1xf32> to vector<8x1xf32>
    %32 = vector.broadcast %31 : vector<8x1xf32> to vector<8x128xf32>
    %33 = arith.select %30, %32, %23 : vector<8x128xi1>, vector<8x128xf32>
    %c0_14 = arith.constant 0 : index
    %c0_15 = arith.constant 0 : index
    %34 = vector.load %arg6[%c0_14, %c0_15] : memref<8x128xf32, #tpu.memory_space<vmem>>, vector<8x128xf32>
    tpu.vector_store %arg6[%c0_14, %c0_15], %33 {strides = array<i32>} : memref<8x128xf32, #tpu.memory_space<vmem>>, vector<8x128xf32>,
    return
  }
  func.func @transform_0(%arg0: i32) -> (i32, i32) {
    %c0_i32 = arith.constant 0 : i32
    %c0_i32_0 = arith.constant 0 : i32
    %c0_i32_1 = arith.constant 0 : i32
    return %c0_i32, %c0_i32_0 : i32, i32
  }
  func.func @transform_1(%arg0: i32) -> (i32, i32) {
    %c0_i32 = arith.constant 0 : i32
    %c0_i32_0 = arith.constant 0 : i32
    return %c0_i32, %arg0 : i32, i32
  }
  func.func @transform_2(%arg0: i32) -> (i32, i32) {
    %c0_i32 = arith.constant 0 : i32
    %c0_i32_0 = arith.constant 0 : i32
    %c0_i32_1 = arith.constant 0 : i32
    return %c0_i32, %c0_i32_0 : i32, i32
  }
  func.func @transform_3(%arg0: i32) -> (i32, i32) {
    %c0_i32 = arith.constant 0 : i32
    %c0_i32_0 = arith.constant 0 : i32
    %c0_i32_1 = arith.constant 0 : i32
    return %c0_i32, %c0_i32_0 : i32, i32
  }
  func.func @transform_4(%arg0: i32) -> (i32, i32) {
    %c0_i32 = arith.constant 0 : i32
    %c0_i32_0 = arith.constant 0 : i32
    %c0_i32_1 = arith.constant 0 : i32
    return %c0_i32, %c0_i32_0 : i32, i32
  }
  func.func @transform_5(%arg0: i32) -> (i32, i32) {
    %c0_i32 = arith.constant 0 : i32
    %c0_i32_0 = arith.constant 0 : i32
    return %c0_i32, %arg0 : i32, i32
  }
}

</mosaic_0001>

<bundles_post_ra>
// kernel: tpu_custom_call.1
= control target key start
LH: loop header
LB: loop body
LE: loop exit
PB: predicated region body
PF: predicated region fallthrough
CT: control target
= control target key end

     0   :  { %s755_s0 = inlined_call_operand.vmem [shape: f32[8,32], index: 0, kind: input, shape index: {}]   ;;  %s756_s1 = inlined_call_operand.hbm [shape: f32[32,512], index: 1, kind: input, shape index: {}]   ;;  %s757_s2 = inlined_call_operand.vmem [shape: s32[8,1], index: 2, kind: input, shape index: {}]   ;;  %s758_s3 = inlined_call_operand.vmem [shape: f32[8,2], index: 3, kind: input, shape index: {}]   ;;  %s759_s4 = inlined_call_operand.<no memory space> [shape: f32[1,1], index: 4, kind: input, shape index: {}]   ;;  %s760_s5 = inlined_call_operand.hbm [shape: f32[8,512], index: 5, kind: output, shape index: {}]  }
   0x1   :  { %10 = sst [smem:[#allocation2]] %s759_s4 }
   0x2   :  { %11 = vsyncpa [#allocation4], 0 }
   0x3   :  { %13 = vsyncpa [#allocation4 + $0x1], 0 }
   0x4   :  { %14 = vsyncpa [#allocation5], 0 }
   0x5   :  { %16 = vsyncpa [#allocation5 + $0x1], 0  ;;  %s621_s20 = smov 0   ;;  %s623_s21 = smov 0  }
   0x6   :  { %s625_s22 = smov 0   ;;  %s627_s23 = smov 0  }
   0x7 LB: > { %s642_s4 = sadd.s32 4294967295, %s581_s23   ;;  %s415_s24 = sadd.s32 4294967294, %s581_s23   ;;  %s581_s23 = sphi %s627_s23, %s769_s23   ;;  %s577_s22 = sphi %s625_s22, %s768_s22   ;;  %s573_s21 = sphi %s623_s21, %s767_s21   ;;  %s569_s20 = sphi %s621_s20, %s766_s20  }
   0x8   : > { %s646_s25 = sadd.s32 1, %s581_s23   ;;  %s50_s26 = sadd.s32 1, %s577_s22 }
   0x9   : > { %s47_s27 = ssub.s32 %s581_s23, %s646_s25  ;;  %p57_p0 = scmp.ne.s32.totalorder %s577_s22, %s573_s21 }
   0xa   : > { %p48_p1 = scmp.eq.s32.totalorder %s47_s27, 0  ;;  %p58_p2 = scmp.eq.s32.totalorder %s581_s23, 0 }
   0xb   : > { %p63_p3 = scmp.ne.s32.totalorder %s573_s21, %s569_s20  ;;  %p64_p4 = scmp.eq.s32.totalorder %s642_s4, 0 }
   0xc   : > { %s658_s28 = scalar_select %p48_p1, %s577_s22, %s50_s26  }
   0xd   : > { %p660_p5 = por %p58_p2, %p57_p0  ;;  %p664_p6 = por %p64_p4, %p63_p3 }
   0xe   : > { %p150_p7 = scmp.eq.s32.totalorder %s642_s4, 3  ;;  %p156_p8 = scmp.eq.s32.totalorder %s415_s24, 3 }
   0xf   : > { %p441_p9 = scmp.lt.s32.totalorder %s581_s23, 4  ;;  %s188_s8 = sand.u32 1, %s577_s22  }
  0x10   : > { %p670_p10 = por %p150_p7, %p57_p0  ;;  %p674_p11 = por %p156_p8, %p63_p3 }
  0x11   : > { %s419_s9 = sshll.u32 %s581_s23, 3  ;;  %s418_s10 = sshll.u32 %s188_s8, 5 }
  0x12   : > { %s196_s13 = scalar_lea.hbm %s756_s1, %s419_s9  ;;  %s192_s15 = scalar_lea.vmem [#allocation3], %s418_s10 }
  0x13   : > { %s197_s14 = sshll.u32 %s196_s13, 4  ;;  %s199_s16 = sshll.u32 %s192_s15, 4  ;;  %s198_s14 = int_to_ptr.hbm [resolvable:$true] %s197_s14  ;;  %s200_s16 = int_to_ptr.vmem [resolvable:$true] %s199_s16 }
  0x14   : > { %p685_p12 = pnand %p441_p9, %p660_p5  ;;  %p420_p13 = scmp.ge.s32.totalorder %s581_s23, 1 }
  0x15   : > { %s189_s18 = scalar_lea.sflag [#allocation4], %s188_s8  ;;  %s485_s19 = sshra.s32 %s198_s14, 4  ;;  %s486_s19 = int_to_ptr.hbm [resolvable:$true] %s485_s19 }
  0x16   : > { %s487_s24 = scalar_lea.hbm %s486_s19, 32  ;;  %p489_p1 = pneg %p685_p12 }
  0x17   : > { %p488_p0 = scmp.ne.s32.totalorder %s486_s19, %s487_s24  ;;  %s492_s9 = scalar_lea.hbm %s756_s1, 128 }
  0x18   : > { %p493_p4 = scmp.lt.s32.totalorder %s486_s19, %s756_s1  ;;  %p494_p5 = scmp.lt.s32.totalorder %s492_s9, %s487_s24 }
  0x19   : > { %p490_p2 = pnand %p489_p1, %p488_p0 }
  0x1a   : > { %p495_p7 = por %p494_p5, %p493_p4 }
  0x1b   : > { %p491_p3 = pneg %p490_p2 }
  0x1d   : > { %p496_p8 = pnand %p495_p7, %p491_p3 }
  0x1f   : > { %499 = shalt.err (!%p496_p8)
}
  0x20   : > { %s583_s8 = smov 512   ;;  %s584_s11 = smov 128  }
  0x21   : > { %s585_s12 = smov 8   ;;  %p207_p9 = scmp.lt.s32.totalorder %s581_s23, 5 }
  0x22   : > { %436 = dma.hbm_to_vmem [thread:$0]  (!%p685_p12), %s198_s14, 512, %s200_s16, %s189_s18, %s583_s8, %s584_s11, %s585_s12  }
  0x23   : > { %p208_p0 = pnand %p420_p13, %p207_p9 }
  0x24   : > { %s704_s13 = sand.u32 (!%p208_p0), 1, %s573_s21  }
  0x25   : > { %211 = sbr.rel (%p208_p0) target bundleno = 191 (0xbf), region = 40  ;;  %s421_s15 = sshll.u32 (!%p208_p0), %s704_s13, 5 }
  0x26   : > { %s214_s19 = scalar_lea.sflag (!%p208_p0), [#allocation4], %s704_s13  ;;  %s217_s24 = scalar_lea.vmem (!%p208_p0), [#allocation3], %s421_s15 }
  0x2a   : > { %560 = dma.done.wait (%p664_p6), %s214_s19, 512  }
  0x2b   : > { %562 = vsyncadd (%p664_p6), %s214_s19, 4294966784  ;;  %v586_v0 = vmov 0   ;;  %v587_v1 = vmov 1   ;;  %v249_v2 = vld [vmem:[%s217_s24 + $0x18] sm:$0xff]  ;;  %v248_v3 = vld [vmem:[%s217_s24 + $0x10] sm:$0xff]  ;;  %s424_s14 = sshll.u32 %s642_s4, 7  ;;  %v313_v34 = vlaneseq }
  0x2c   : > { %480 = vset.pattern.permute.xlu0 %v586_v0  ;;  %481 = vset.pattern.permute.xlu1 %v587_v1  ;;  %v247_v4 = vld [vmem:[%s217_s24 + $0x8] sm:$0xff]  ;;  %v246_v6 = vld [vmem:[%s217_s24] sm:$0xff]  ;;  %v252_v8 = vmul.f32 %v248_v3, %v248_v3  ;;  %v317_v11 = vstv %s424_s14  ;;  %v253_v12 = vmul.f32 %v249_v2, %v249_v2  ;;  %vm274_vm0 = vcmask 261120   ;;  %s300_s9 = sld [smem:[#allocation2]]  ;;  %s422_s29 = sshll.u32 %s704_s13, 3 }
  0x2d   : > { %290 = vmatpush.msra.mxu0 %v249_v2  ;;  %v251_v5 = vmul.f32 %v247_v4, %v247_v4  ;;  %v301_v7 = vld [vmem:[%s758_s3] sm:$0xff]  ;;  %v250_v9 = vmul.f32 %v246_v6, %v246_v6  ;;  %s426_s10 = sshll.u32 %s642_s4, 3  ;;  %v314_v38 = vand.u32 127, %v313_v34  ;;  %s244_s15 = scalar_lea.vmem [#allocation6], %s422_s29 }
  0x2e   : > { %304 = vperm.xlu0 %480, %v301_v7   ;;  %324 = vperm.xlu1 %481, %v301_v7   ;;  %v315_v10 = vld [vmem:[%s757_s2] sm:$0xff]  ;;  %s340_s12 = scalar_lea.hbm %s760_s5, %s426_s10  ;;  %s342_s19 = sshll.u32 %s244_s15, 4  ;;  %s343_s19 = int_to_ptr.vmem [resolvable:$true] %s342_s19 }
  0x2f   : > { %291 = vmatpush.msra.mxu0 %v248_v3  ;;  %v254_v13 = vadd.f32 %v251_v5, %v250_v9  ;;  %v245_v14 = vld [vmem:[%s755_s0] sm:$0xff]  ;;  %v318_v16 = vsub.s32 %v315_v10, %v317_v11  ;;  %s344_s24 = sshll.u32 %s340_s12, 4  ;;  %s330_s4 = scalar_lea.sflag [#allocation5], %s704_s13  ;;  %s345_s24 = int_to_ptr.hbm [resolvable:$true] %s344_s24 }
  0x30   : > { %s529_s14 = sshra.s32 %s345_s24, 4  ;;  %s535_s18 = scalar_lea.hbm %s760_s5, 32  ;;  %s530_s14 = int_to_ptr.hbm [resolvable:$true] %s529_s14 }
  0x31   : > { %292 = vmatpush.msra.mxu0 %v247_v4  ;;  %v255_v15 = vadd.f32 %v254_v13, %v252_v8  ;;  %s531_s16 = scalar_lea.hbm %s530_s14, 8  ;;  %p536_p1 = scmp.lt.s32.totalorder %s530_s14, %s760_s5 }
  0x32   : > { %v309_v36 = vstv %s300_s9  ;;  %p532_p6 = scmp.ne.s32.totalorder %s530_s14, %s531_s16  ;;  %p537_p2 = scmp.lt.s32.totalorder %s535_s18, %s531_s16 }
  0x33   : > { %293 = vmatpush.msra.mxu0 %v246_v6  ;;  %v256_v17 = vadd.f32 %v255_v15, %v253_v12 }
  0x34   : > { %423 = vmatmul.msk.f32.vlgmr.msra.gmra.mxu0 %vm274_vm0, %v245_v14  ;;  %p533_p12 = pnand %p532_p6, %p670_p10  ;;  %p538_p3 = por %p537_p2, %p536_p1 }
  0x35   : > { %v257_v18 = vrot.slane %v256_v17, 4 }
  0x36   : > { %320 = vperm.xlu0 %480, %v318_v16   ;;  %p534_p13 = pneg %p533_p12 }
  0x37   : > { %v258_v19 = vadd.f32 %v257_v18, %v256_v17 }
  0x38   : > { %p539_p4 = pnand %p538_p3, %p534_p13 }
  0x39   : > { %v259_v20 = vrot.slane %v258_v19, 2 }
  0x3b   : > { %v260_v21 = vadd.f32 %v259_v20, %v258_v19 }
  0x3d   : > { %v261_v22 = vrot.slane %v260_v21, 1 }
  0x3e   : > { %482 = vset.pattern.permute.xlu0 %v587_v1 }
  0x3f   : > { %v262_v23 = vadd.f32 %v261_v22, %v260_v21 }
  0x41   : > { %v263_v24 = vmax.f32 %v262_v23, 1e-24 }
  0x43   : > { %483 = vrsqrt.f32 %v263_v24  ;;  %vm270_vm1 = vweird.f32 %v263_v24 }
  0x49   : > { %v484_v25 = vpop.eup %483 }
  0x4a   : > { %v265_v26 = vmul.f32 %v484_v25, %v263_v24  ;;  %vm271_vm2 = vweird.f32 %v484_v25 }
  0x4b   : > { %vm272_vm3 = vmor %vm270_vm1, %vm271_vm2 }
  0x4c   : > { %v266_v27 = vmul.f32 %v484_v25, %v265_v26 }
  0x4e   : > { %v267_v28 = vmul.f32 0.5, %v266_v27 }
  0x50   : > { %v268_v29 = vsub.f32 1.5, %v267_v28 }
  0x52   : > { %v269_v30 = vmul.f32 %v484_v25, %v268_v29 }
  0x54   : > { %v273_v32 = vsel %vm272_vm3, %v484_v25, %v269_v30 }
  0xa0   : > { %v305_v31 = vpop.permute.xlu0 %304  ;;  %v325_v43 = vpop.permute.xlu1 %324 }
  0xa8   : > { %v321_v41 = vpop.permute.xlu0 %320 }
  0xa9   : > { %vm322_vm5 = vcmp.eq.s32.totalorder %v314_v38, %v321_v41 }
  0xb1   : > { %v295_v33 = vpop.f32.mrf.mxu0 }
  0xb2   : > { %v298_v35 = vmul.f32 %v295_v33, %v273_v32 }
  0xb4   : > { %v299_v37 = vmin.f32 %v298_v35, 1.0 }
  0xb6   : > { %v308_v39 = vmul.f32 64.0, %v299_v37  ;;  %v310_v40 = vadd.f32 %v309_v36, %v299_v37  ;;  %vm307_vm4 = vcmp.gt.f32.partialorder %v299_v37, %v305_v31 }
  0xb8   : > { %v311_v42 = vmul.f32 %v310_v40, %v308_v39 }
  0xba   : > { %v312_v44 = vsel %vm307_vm4, %v311_v42, %v308_v39 }
  0xbb   : > { %v327_v45 = vsel %vm322_vm5, %v325_v43, %v312_v44 }
  0xbc   : > { %328 = vst [vmem:[%s244_s15] sm:$0xff] %v327_v45 }
  0xbd   : > { %542 = shalt.err (!%p539_p4)
}
  0xbe   : > { %431 = dma.vmem_to_hbm [thread:$0]  (%p670_p10), %s343_s19, 128, %s345_s24, %s330_s4  }
  0xbf PF: > { %p442_p5 = scmp.ge.s32.totalorder %s581_s23, 2  ;;  %s356_s13 = sand.u32 1, %s569_s20  }
  0xc0   : > { %s357_s9 = scalar_lea.sflag [#allocation5], %s356_s13 }
  0xc1   : > { %p438_p7 = pnand %p442_p5, %p674_p11 }
  0xc3   : > { %p439_p8 = pneg %p438_p7 }
  0xc5   : > { %564 = dma.done.wait (%p439_p8), %s357_s9, 128  }
  0xc6   : > { %566 = vsyncadd (%p439_p8), %s357_s9, 4294967168  ;;  %p19_p9 = scmp.ge.s32.totalorder %s646_s25, 6   ;;  %s766_s20 = smov %s573_s21 }
  0xc7   : > { %s767_s21 = smov %s577_s22  ;;  %s768_s22 = smov %s658_s28 }
  0xc8   : > { %s769_s23 = smov %s646_s25  ;;  %21 = sbr.rel (!%p19_p9) target bundleno = 7 (0x7), region = 85 }
  0xcd   :  { %363 = vsyncpa [#allocation4], 1 }
  0xce   :  { %365 = vsyncpa [#allocation4 + $0x1], 1 }
  0xcf   :  { %366 = vsyncpa [#allocation5], 1 }
  0xd0   :  { %368 = vsyncpa [#allocation5 + $0x1], 1 }

</bundles_post_ra>
